<compile_context>
chip_gen: v7x
topology: tpu7x:2x2x1
jax: 0.10.0
libtpu: 0.0.40
codegen_flags: <defaults>
</compile_context>

<pallas_src>
import jax
import jax.numpy as jnp
from jax.experimental import pallas as pl
from jax.experimental.pallas import tpu as pltpu


# ---------------------------------------------------------------------------
# Kernel 1: conv2 + bn2 + relu, conv3 + bn3 + relu, running max over points.
# Grid = (B, n_tiles); the output block (1, 1, 1024) is resident across the
# "arbitrary" n axis and used as the max accumulator.
# ---------------------------------------------------------------------------
def conv_max_kernel(x_ref, w2_ref, s2_ref, t2_ref, w3_ref, s3_ref, t3_ref,
                    out_ref):
    n = pl.program_id(1)

    h = x_ref[0]                                               # (tile_N, 64) bf16
    # conv2 + bn2 + relu   (64 -> 128)   bf16 x bf16 -> f32 accum
    h = jnp.dot(h, w2_ref[...], preferred_element_type=jnp.float32)
    h = jnp.maximum(h * s2_ref[...] + t2_ref[...], 0.0)
    # conv3 + bn3 + relu   (128 -> 1024)
    h = jnp.dot(h.astype(jnp.bfloat16), w3_ref[...],
                preferred_element_type=jnp.float32)
    h = jnp.maximum(h * s3_ref[...] + t3_ref[...], 0.0)        # (tile_N, 1024) f32

    m = jnp.max(h, axis=0, keepdims=True)                      # (1, 1024)

    @pl.when(n == 0)
    def _():
        out_ref[0] = m

    @pl.when(n > 0)
    def _():
        out_ref[0] = jnp.maximum(out_ref[0], m)


# ---------------------------------------------------------------------------
# Kernel 2: FC head batched over B (one grid step, M = B).
# ---------------------------------------------------------------------------
def fc_head_kernel(feat_ref, w4_ref, s4_ref, t4_ref, w5_ref, s5_ref, t5_ref,
                   w6_ref, b6_ref, iden_ref, out_ref):
    # fc1 + bn4 + relu   (1024 -> 512)
    g = jnp.dot(feat_ref[...].astype(jnp.bfloat16), w4_ref[...],
                preferred_element_type=jnp.float32)
    g = jnp.maximum(g * s4_ref[...] + t4_ref[...], 0.0)
    # fc2 + bn5 + relu   (512 -> 256)
    g = jnp.dot(g.astype(jnp.bfloat16), w5_ref[...],
                preferred_element_type=jnp.float32)
    g = jnp.maximum(g * s5_ref[...] + t5_ref[...], 0.0)
    # fc3 + bias + identity   (256 -> K*K)
    o = jnp.dot(g.astype(jnp.bfloat16), w6_ref[...],
                preferred_element_type=jnp.float32)
    out_ref[...] = o + b6_ref[...] + iden_ref[...]


def _round_up(x, m):
    return ((x + m - 1) // m) * m


def stnkd_forward(x_bkn, params, k, tile_n=512):
    """x_bkn: (B, K, N) float32 (PyTorch NCL layout). Returns (B, K, K) f32."""
    B, K, N = x_bkn.shape
    assert K == k
    (w1, s1, t1, w2, s2, t2, w3, s3, t3,
     w4, s4, t4, w5, s5, t5, w6, b6) = params

    x = jnp.transpose(x_bkn, (0, 2, 1))                        # (B, N, K)

    # conv1 + bn1 + relu in plain XLA: K-wide contraction (K=4) is lane-sparse
    # and memory-bound; feed the kernel a lane-dense (N, 64) bf16 activation.
    h1 = jnp.einsum('bnk,kc->bnc', x, w1,
                    preferred_element_type=jnp.float32)
    h1 = jnp.maximum(h1 * s1 + t1, 0.0).astype(jnp.bfloat16)   # (B, N, 64)

    # Tile the point axis; pad with copies of point 0 (does not change the max).
    tile_N = min(_round_up(N, 16), max(16, (tile_n // 16) * 16))
    n_pad = _round_up(N, tile_N)
    if n_pad != N:
        pad = jnp.broadcast_to(h1[:, :1, :], (B, n_pad - N, h1.shape[-1]))
        h1 = jnp.concatenate([h1, pad], axis=1)
    n_tiles = n_pad // tile_N

    w2b, w3b, w4b, w5b, w6b = (w.astype(jnp.bfloat16)
                               for w in (w2, w3, w4, w5, w6))

    def const_spec(arr):
        nd = arr.ndim
        return pl.BlockSpec(arr.shape, lambda b, n, _nd=nd: (0,) * _nd)

    feat = pl.pallas_call(
        conv_max_kernel,
        out_shape=jax.ShapeDtypeStruct((B, 1, 1024), jnp.float32),
        grid=(B, n_tiles),
        in_specs=[pl.BlockSpec((1, tile_N, 64), lambda b, n: (b, n, 0)),
                  const_spec(w2b), const_spec(s2), const_spec(t2),
                  const_spec(w3b), const_spec(s3), const_spec(t3)],
        out_specs=pl.BlockSpec((1, 1, 1024), lambda b, n: (b, 0, 0)),
        compiler_params=pltpu.CompilerParams(
            dimension_semantics=("parallel", "arbitrary"),
            vmem_limit_bytes=32 * 1024 * 1024),
    )(h1, w2b, s2, t2, w3b, s3, t3)
    feat = feat.reshape(B, 1024)                               # lane-dense f32

    iden = jnp.eye(k, dtype=jnp.float32).reshape(1, k * k)

    def head_spec(arr):
        nd = arr.ndim
        return pl.BlockSpec(arr.shape, lambda i, _nd=nd: (0,) * _nd)

    head_args = (feat, w4b, s4, t4, w5b, s5, t5, w6b, b6, iden)
    out = pl.pallas_call(
        fc_head_kernel,
        out_shape=jax.ShapeDtypeStruct((B, k * k), jnp.float32),
        grid=(1,),
        in_specs=[head_spec(a) for a in head_args],
        out_specs=pl.BlockSpec((B, k * k), lambda i: (0, 0)),
        compiler_params=pltpu.CompilerParams(
            dimension_semantics=("arbitrary",),
            vmem_limit_bytes=32 * 1024 * 1024),
    )(*head_args)
    return out.reshape(B, k, k)


def make_params(key, k):
    """Deterministic synthetic parameters matching STNkd.__init__ shapes."""
    dims = [(k, 64), (64, 128), (128, 1024), (1024, 512), (512, 256), (256, k * k)]
    eps = 1e-5
    keys = jax.random.split(key, 32)
    ki = iter(range(32))
    params = []
    for li, (cin, cout) in enumerate(dims):
        w = 0.05 * jax.random.normal(keys[next(ki)], (cin, cout), jnp.float32)
        if li < 5:   # conv1-3, fc1-2 have a BatchNorm after them (bias absorbed)
            gamma = 1.0 + 0.1 * jax.random.normal(keys[next(ki)], (1, cout), jnp.float32)
            beta = 0.1 * jax.random.normal(keys[next(ki)], (1, cout), jnp.float32)
            rmean = 0.1 * jax.random.normal(keys[next(ki)], (1, cout), jnp.float32)
            rvar = 1.0 + 0.1 * jnp.abs(jax.random.normal(keys[next(ki)], (1, cout), jnp.float32))
            bias = 0.05 * jax.random.normal(keys[next(ki)], (1, cout), jnp.float32)
            scale = gamma / jnp.sqrt(rvar + eps)
            shift = beta + (bias - rmean) * scale
            params += [w, scale, shift]
        else:        # fc3: plain bias
            b = 0.05 * jax.random.normal(keys[next(ki)], (1, cout), jnp.float32)
            params += [w, b]
    return tuple(params)


def stnkd_reference(x_bkn, params, k):
    """Pure-jnp reference mirroring the kernel's bf16/f32 mixed precision."""
    (w1, s1, t1, w2, s2, t2, w3, s3, t3,
     w4, s4, t4, w5, s5, t5, w6, b6) = params
    bf16, f32 = jnp.bfloat16, jnp.float32
    x = jnp.transpose(x_bkn, (0, 2, 1))                        # (B, N, K)
    h = jnp.einsum('bnk,kc->bnc', x, w1, preferred_element_type=f32)
    h = jnp.maximum(h * s1 + t1, 0.0).astype(bf16)
    h = jnp.einsum('bnc,cd->bnd', h, w2.astype(bf16), preferred_element_type=f32)
    h = jnp.maximum(h * s2 + t2, 0.0)
    h = jnp.einsum('bnc,cd->bnd', h.astype(bf16), w3.astype(bf16),
                   preferred_element_type=f32)
    h = jnp.maximum(h * s3 + t3, 0.0)
    feat = jnp.max(h, axis=1)                                  # (B, 1024)
    g = jnp.dot(feat.astype(bf16), w4.astype(bf16), preferred_element_type=f32)
    g = jnp.maximum(g * s4 + t4, 0.0)
    g = jnp.dot(g.astype(bf16), w5.astype(bf16), preferred_element_type=f32)
    g = jnp.maximum(g * s5 + t5, 0.0)
    o = jnp.dot(g.astype(bf16), w6.astype(bf16), preferred_element_type=f32)
    o = o + b6 + jnp.eye(k, dtype=f32).reshape(1, k * k)
    return o.reshape(-1, k, k)


if __name__ == "__main__":
    B, K, N = 2, 4, 40                      # PyTorch (B, C, L) layout input
    key = jax.random.PRNGKey(0)
    kx, kp = jax.random.split(key)
    x = jax.random.normal(kx, (B, K, N), jnp.float32)
    params = make_params(kp, K)

    # tile_n=16 forces multiple N-tiles (with padding) at this small test size.
    out = stnkd_forward(x, params, K, tile_n=16)
    out = jax.block_until_ready(out)

    ref = stnkd_reference(x, params, K)
    assert out.shape == (B, K, K)
    assert jnp.allclose(out, ref, atol=2e-3, rtol=2e-3), "mismatch vs reference"
    print("KERNEL_OK")
</pallas_src>

<mosaic_0001>
module attributes {stable_mosaic.version = 11 : i64} {
  func.func @conv_max_kernel(%arg0: i32, %arg1: i32, %arg2: memref<1x16x64xbf16, #tpu.memory_space<vmem>>, %arg3: memref<64x128xbf16, #tpu.memory_space<vmem>>, %arg4: memref<1x128xf32, #tpu.memory_space<vmem>>, %arg5: memref<1x128xf32, #tpu.memory_space<vmem>>, %arg6: memref<128x1024xbf16, #tpu.memory_space<vmem>>, %arg7: memref<1x1024xf32, #tpu.memory_space<vmem>>, %arg8: memref<1x1024xf32, #tpu.memory_space<vmem>>, %arg9: memref<1x1x1024xf32, #tpu.memory_space<vmem>>) attributes {dimension_semantics = [#tpu.dimension_semantics<parallel>, #tpu.dimension_semantics<arbitrary>], iteration_bounds = array<i64: 2, 3>, scalar_prefetch = 0 : i64, scratch_operands = 0 : i64, tpu.core_type = #tpu.core_type<tc>, window_params = [{transform_indices = @transform_0, window_bounds = array<i64: 1, 16, 64>}, {pipeline_mode = #tpu.pipeline_mode<synchronous>, transform_indices = @transform_1, window_bounds = array<i64: 64, 128>}, {pipeline_mode = #tpu.pipeline_mode<synchronous>, transform_indices = @transform_2, window_bounds = array<i64: 1, 128>}, {pipeline_mode = #tpu.pipeline_mode<synchronous>, transform_indices = @transform_3, window_bounds = array<i64: 1, 128>}, {pipeline_mode = #tpu.pipeline_mode<synchronous>, transform_indices = @transform_4, window_bounds = array<i64: 128, 1024>}, {pipeline_mode = #tpu.pipeline_mode<synchronous>, transform_indices = @transform_5, window_bounds = array<i64: 1, 1024>}, {pipeline_mode = #tpu.pipeline_mode<synchronous>, transform_indices = @transform_6, window_bounds = array<i64: 1, 1024>}, {transform_indices = @transform_7, window_bounds = array<i64: 1, 1, 1024>}]} {
    %c0 = arith.constant 0 : index
    %c0_0 = arith.constant 0 : index
    %c0_1 = arith.constant 0 : index
    %0 = vector.load %arg2[%c0, %c0_0, %c0_1] : memref<1x16x64xbf16, #tpu.memory_space<vmem>>, vector<1x16x64xbf16>
    %1 = vector.shape_cast %0 : vector<1x16x64xbf16> to vector<16x64xbf16>
    %c0_2 = arith.constant 0 : index
    %c0_3 = arith.constant 0 : index
    %2 = vector.load %arg3[%c0_2, %c0_3] : memref<64x128xbf16, #tpu.memory_space<vmem>>, vector<64x128xbf16>
    %cst = arith.constant dense<0.000000e+00> : vector<16x128xf32>
    %3 = tpu.matmul %1, %2, %cst {dimension_numbers = #tpu.dot_dimension_numbers<[1], [0], [0], [1], [0, 0, 1, 1], [], []>} : vector<16x64xbf16>, vector<64x128xbf16>, vector<16x128xf32> -> vector<16x128xf32>
    %c0_4 = arith.constant 0 : index
    %c0_5 = arith.constant 0 : index
    %4 = vector.load %arg4[%c0_4, %c0_5] : memref<1x128xf32, #tpu.memory_space<vmem>>, vector<1x128xf32>
    %5 = vector.broadcast %4 : vector<1x128xf32> to vector<16x128xf32>
    %6 = arith.mulf %3, %5 : vector<16x128xf32>
    %c0_6 = arith.constant 0 : index
    %c0_7 = arith.constant 0 : index
    %7 = vector.load %arg5[%c0_6, %c0_7] : memref<1x128xf32, #tpu.memory_space<vmem>>, vector<1x128xf32>
    %8 = vector.broadcast %7 : vector<1x128xf32> to vector<16x128xf32>
    %9 = arith.addf %6, %8 : vector<16x128xf32>
    %cst_8 = arith.constant 0.000000e+00 : f32
    %10 = vector.broadcast %cst_8 : f32 to vector<16x128xf32>
    %11 = arith.maximumf %9, %10 : vector<16x128xf32>
    %12 = arith.truncf %11 : vector<16x128xf32> to vector<16x128xbf16>
    %c0_9 = arith.constant 0 : index
    %c0_10 = arith.constant 0 : index
    %13 = vector.load %arg6[%c0_9, %c0_10] : memref<128x1024xbf16, #tpu.memory_space<vmem>>, vector<128x1024xbf16>
    %cst_11 = arith.constant dense<0.000000e+00> : vector<16x1024xf32>
    %14 = tpu.matmul %12, %13, %cst_11 {dimension_numbers = #tpu.dot_dimension_numbers<[1], [0], [0], [1], [0, 0, 1, 1], [], []>} : vector<16x128xbf16>, vector<128x1024xbf16>, vector<16x1024xf32> -> vector<16x1024xf32>
    %c0_12 = arith.constant 0 : index
    %c0_13 = arith.constant 0 : index
    %15 = vector.load %arg7[%c0_12, %c0_13] : memref<1x1024xf32, #tpu.memory_space<vmem>>, vector<1x1024xf32>
    %16 = vector.broadcast %15 : vector<1x1024xf32> to vector<16x1024xf32>
    %17 = arith.mulf %14, %16 : vector<16x1024xf32>
    %c0_14 = arith.constant 0 : index
    %c0_15 = arith.constant 0 : index
    %18 = vector.load %arg8[%c0_14, %c0_15] : memref<1x1024xf32, #tpu.memory_space<vmem>>, vector<1x1024xf32>
    %19 = vector.broadcast %18 : vector<1x1024xf32> to vector<16x1024xf32>
    %20 = arith.addf %17, %19 : vector<16x1024xf32>
    %cst_16 = arith.constant 0.000000e+00 : f32
    %21 = vector.broadcast %cst_16 : f32 to vector<16x1024xf32>
    %22 = arith.maximumf %20, %21 : vector<16x1024xf32>
    %cst_17 = arith.constant dense<0xFF800000> : vector<1024xf32>
    %23 = vector.multi_reduction <maximumf>, %22, %cst_17 [0] : vector<16x1024xf32> to vector<1024xf32>
    %24 = vector.shape_cast %23 : vector<1024xf32> to vector<1x1024xf32>
    %c0_i32 = arith.constant 0 : i32
    %25 = arith.cmpi eq, %arg1, %c0_i32 : i32
    %26 = arith.extui %25 : i1 to i32
    %c0_i32_18 = arith.constant 0 : i32
    %27 = arith.cmpi ne, %26, %c0_i32_18 : i32
    scf.if %27 {
      %c0_21 = arith.constant 0 : index
      %c0_22 = arith.constant 0 : index
      %c0_23 = arith.constant 0 : index
      %31 = vector.load %arg9[%c0_21, %c0_22, %c0_23] : memref<1x1x1024xf32, #tpu.memory_space<vmem>>, vector<1x1x1024xf32>
      %32 = vector.shape_cast %31 : vector<1x1x1024xf32> to vector<1x1024xf32>
      %33 = vector.shape_cast %24 : vector<1x1024xf32> to vector<1x1x1024xf32>
      tpu.vector_store %arg9[%c0_21, %c0_22, %c0_23], %33 {strides = array<i32>} : memref<1x1x1024xf32, #tpu.memory_space<vmem>>, vector<1x1x1024xf32>,
    } else {
    }
    %c0_i32_19 = arith.constant 0 : i32
    %28 = arith.cmpi sgt, %arg1, %c0_i32_19 : i32
    %29 = arith.extui %28 : i1 to i32
    %c0_i32_20 = arith.constant 0 : i32
    %30 = arith.cmpi ne, %29, %c0_i32_20 : i32
    scf.if %30 {
      %c0_21 = arith.constant 0 : index
      %c0_22 = arith.constant 0 : index
      %c0_23 = arith.constant 0 : index
      %31 = vector.load %arg9[%c0_21, %c0_22, %c0_23] : memref<1x1x1024xf32, #tpu.memory_space<vmem>>, vector<1x1x1024xf32>
      %32 = vector.shape_cast %31 : vector<1x1x1024xf32> to vector<1x1024xf32>
      %33 = arith.maximumf %32, %24 : vector<1x1024xf32>
      %c0_24 = arith.constant 0 : index
      %c0_25 = arith.constant 0 : index
      %c0_26 = arith.constant 0 : index
      %34 = vector.load %arg9[%c0_24, %c0_25, %c0_26] : memref<1x1x1024xf32, #tpu.memory_space<vmem>>, vector<1x1x1024xf32>
      %35 = vector.shape_cast %34 : vector<1x1x1024xf32> to vector<1x1024xf32>
      %36 = vector.shape_cast %33 : vector<1x1024xf32> to vector<1x1x1024xf32>
      tpu.vector_store %arg9[%c0_24, %c0_25, %c0_26], %36 {strides = array<i32>} : memref<1x1x1024xf32, #tpu.memory_space<vmem>>, vector<1x1x1024xf32>,
    } else {
    }
    return
  }
  func.func @transform_0(%arg0: i32, %arg1: i32) -> (i32, i32, i32) {
    %c0_i32 = arith.constant 0 : i32
    %c0_i32_0 = arith.constant 0 : i32
    return %arg0, %arg1, %c0_i32 : i32, i32, i32
  }
  func.func @transform_1(%arg0: i32, %arg1: i32) -> (i32, i32) {
    %c0_i32 = arith.constant 0 : i32
    %c0_i32_0 = arith.constant 0 : i32
    %c0_i32_1 = arith.constant 0 : i32
    return %c0_i32, %c0_i32_0 : i32, i32
  }
  func.func @transform_2(%arg0: i32, %arg1: i32) -> (i32, i32) {
    %c0_i32 = arith.constant 0 : i32
    %c0_i32_0 = arith.constant 0 : i32
    %c0_i32_1 = arith.constant 0 : i32
    return %c0_i32, %c0_i32_0 : i32, i32
  }
  func.func @transform_3(%arg0: i32, %arg1: i32) -> (i32, i32) {
    %c0_i32 = arith.constant 0 : i32
    %c0_i32_0 = arith.constant 0 : i32
    %c0_i32_1 = arith.constant 0 : i32
    return %c0_i32, %c0_i32_0 : i32, i32
  }
  func.func @transform_4(%arg0: i32, %arg1: i32) -> (i32, i32) {
    %c0_i32 = arith.constant 0 : i32
    %c0_i32_0 = arith.constant 0 : i32
    %c0_i32_1 = arith.constant 0 : i32
    return %c0_i32, %c0_i32_0 : i32, i32
  }
  func.func @transform_5(%arg0: i32, %arg1: i32) -> (i32, i32) {
    %c0_i32 = arith.constant 0 : i32
    %c0_i32_0 = arith.constant 0 : i32
    %c0_i32_1 = arith.constant 0 : i32
    return %c0_i32, %c0_i32_0 : i32, i32
  }
  func.func @transform_6(%arg0: i32, %arg1: i32) -> (i32, i32) {
    %c0_i32 = arith.constant 0 : i32
    %c0_i32_0 = arith.constant 0 : i32
    %c0_i32_1 = arith.constant 0 : i32
    return %c0_i32, %c0_i32_0 : i32, i32
  }
  func.func @transform_7(%arg0: i32, %arg1: i32) -> (i32, i32, i32) {
    %c0_i32 = arith.constant 0 : i32
    %c0_i32_0 = arith.constant 0 : i32
    %c0_i32_1 = arith.constant 0 : i32
    return %arg0, %c0_i32, %c0_i32_0 : i32, i32, i32
  }
}

</mosaic_0001>

<bundles_post_ra>
// kernel: tpu_custom_call.1
= control target key start
LH: loop header
LB: loop body
LE: loop exit
PB: predicated region body
PF: predicated region fallthrough
CT: control target
= control target key end

     0   :  { %s2335_s0 = inlined_call_operand.hbm [shape: bf16[2,48,64], index: 0, kind: input, shape index: {}]   ;;  %s2336_s1 = inlined_call_operand.hbm [shape: bf16[64,128], index: 1, kind: input, shape index: {}]   ;;  %s2337_s2 = inlined_call_operand.vmem [shape: f32[1,128], index: 2, kind: input, shape index: {}]   ;;  %s2338_s3 = inlined_call_operand.vmem [shape: f32[1,128], index: 3, kind: input, shape index: {}]   ;;  %s2339_s4 = inlined_call_operand.hbm [shape: bf16[128,1024], index: 4, kind: input, shape index: {}]   ;;  %s2340_s5 = inlined_call_operand.vmem [shape: f32[1,1024], index: 5, kind: input, shape index: {}]   ;;  %s2341_s6 = inlined_call_operand.vmem [shape: f32[1,1024], index: 6, kind: input, shape index: {}]   ;;  %s2342_s7 = inlined_call_operand.hbm [shape: f32[2,1,1024], index: 7, kind: output, shape index: {}]  }
   0x1   :  { %2357 = sst [smem:[#allocation19_spill]] %s2336_s1 }
   0x2   :  { %2358 = sst [smem:[#allocation20_spill]] %s2338_s3 }
   0x3   :  { %2359 = sst [smem:[#allocation21_spill]] %s2339_s4 }
   0x4   :  { %2360 = sst [smem:[#allocation22_spill]] %s2340_s5 }
   0x5   :  { %2361 = sst [smem:[#allocation23_spill]] %s2341_s6 }
   0x6   :  { %2362 = sst [smem:[#allocation24_spill]] %s2342_s7 }
   0x7   :  { %12 = vsyncpa [#allocation3], 0 }
   0x8   :  { %14 = vsyncpa [#allocation3 + $0x1], 0 }
   0x9   :  { %15 = vsyncpa [#allocation6], 0 }
   0xa   :  { %16 = vsyncpa [#allocation4], 0 }
   0xb   :  { %18 = vsyncpa [#allocation4 + $0x1], 0  ;;  %s1955_s24 = smov 0   ;;  %s1957_s25 = smov 0  }
   0xc   :  { %s1959_s26 = smov 0   ;;  %s1961_s27 = smov 0  }
   0xd   :  { %s1963_s28 = smov 0   ;;  %s1965_s29 = smov 0  }
   0xe   :  { %s1967_s30 = smov 0   ;;  %s1969_s8 = smov 0  }
   0xf   :  { %s1971_s9 = smov 0   ;;  %s1973_s10 = smov 0  }
  0x10   :  { %s1975_s11 = smov 0  }
  0x11 LB: > { %2363 = sst [smem:[#allocation12_spill]] %s1860_s24  ;;  %s1439_s12 = sadd.s32 4294967295, %s1900_s11   ;;  %s1900_s11 = sphi %s1975_s11, %s24_s11   ;;  %s1896_s10 = sphi %s1973_s10, %s2407_s10   ;;  %s1892_s9 = sphi %s1971_s9, %s2399_s9   ;;  %s1888_s8 = sphi %s1969_s8, %s2406_s8   ;;  %s1884_s30 = sphi %s1967_s30, %s2398_s30   ;;  %s1880_s29 = sphi %s1965_s29, %s2405_s29   ;;  %s1876_s28 = sphi %s1963_s28, %s2404_s28   ;;  %s1872_s27 = sphi %s1961_s27, %s2403_s27   ;;  %s1868_s26 = sphi %s1959_s26, %s2402_s26   ;;  %s1864_s25 = sphi %s1957_s25, %s2401_s25   ;;  %s1860_s24 = sphi %s1955_s24, %s2400_s24  }
  0x12   : > { %2364 = sst [smem:[#allocation13_spill]] %s1884_s30  ;;  %s1440_s13 = sadd.s32 4294967294, %s1900_s11  }
  0x13   : > { %2365 = sst [smem:[#allocation14_spill]] %s1888_s8  ;;  %p58_p0 = scmp.ne.s32.totalorder %s1876_s28, %s1872_s27 }
  0x14   : > { %2366 = sst [smem:[#allocation15_spill]] %s1892_s9  ;;  %p2011_p1 = scmp.eq.s32.totalorder %s1439_s12, 0 }
  0x15   : > { %p207_p2 = scmp.ne.s32.totalorder %s1868_s26, %s1864_s25  ;;  %p208_p4 = scmp.eq.s32.totalorder %s1439_s12, 5 }
  0x16   : > { %s2367_s14 = scalar_select %p2011_p1, 1, 0 }
  0x17   : > { %p2020_p3 = por %p2011_p1, %p58_p0  ;;  %p213_p5 = scmp.ne.s32.totalorder %s1864_s25, %s1860_s24 }
  0x18   : > { %p214_p6 = scmp.eq.s32.totalorder %s1440_s13, 5  ;;  %p2026_p7 = por %p208_p4, %p207_p2 }
  0x19   : > { %s2368_s16 = scalar_select %p2020_p3, 1, 0 }
  0x1a   : > { %s2369_s17 = scalar_select %p2026_p7, 1, 0 }
  0x1b   : > { %p1441_p8 = scmp.ge.s32.totalorder %s1900_s11, 1  ;;  %p2031_p9 = por %p214_p6, %p213_p5 }
  0x1c   : > { %2370 = sst [smem:[#allocation16_spill]] %s2369_s17  ;;  %p221_p10 = scmp.lt.s32.totalorder %s1900_s11, 7 }
  0x1d   : > { %s2371_s18 = scalar_select %p2031_p9, 1, 0 }
  0x1e   : > { %p2036_p11 = pnand %p1441_p8, %p221_p10  ;;  %s1902_s20 = smov [#allocation5]  }
  0x1f   : > { %2372 = sst [smem:[#allocation17_spill]] %s2371_s18  ;;  %s233_s21 = sshll.u32 %s1902_s20, 4  ;;  %s234_s21 = int_to_ptr.vmem [resolvable:$true] %s233_s21 }
  0x20   : > { %s2373_s19 = scalar_select %p2036_p11, 1, 0 }
  0x21   : > { %p1563_p12 = pneg %p2036_p11  ;;  %s1903_s23 = smov [#allocation7]  }
  0x22   : > { %s252_s27 = sshll.u32 %s1903_s23, 4  ;;  %s2375_s1 = sld [smem:[#allocation19_spill]]  ;;  %s2048_s27 = int_to_ptr.vmem [resolvable:$true] %s252_s27 }
  0x23   : > { %p2044_p13 = pnand %p1563_p12, %p2011_p1 }
  0x25   : > { %p1690_p2 = pneg %p2044_p13 }
  0x28   : > { %s1688_s15 = scalar_lea.hbm %s2375_s1, 512 }
  0x29   : > { %p1689_p0 = scmp.ne.s32.totalorder %s2375_s1, %s1688_s15  ;;  %p1695_p6 = scmp.lt.u32.totalorder %s1688_s15, %s2375_s1 }
  0x2b   : > { %p1691_p4 = pnand %p1690_p2, %p1689_p0 }
  0x2d   : > { %p1692_p5 = pneg %p1691_p4 }
  0x2f   : > { %p1697_p8 = pnand %p1695_p6, %p1692_p5 }
  0x31   : > { %1700 = shalt.err (!%p1697_p8)
}
  0x32   : > { %s1701_s23 = scalar_lea.vmem %s234_s21, 512  ;;  %p1709_p7 = scmp.lt.s32.totalorder %s234_s21, %s234_s21 }
  0x33   : > { %p1702_p10 = scmp.ne.s32.totalorder %s234_s21, %s1701_s23  ;;  %p1710_p1 = scmp.lt.s32.totalorder %s1701_s23, %s1701_s23 }
  0x35   : > { %p1704_p12 = pnand %p1702_p10, %p1690_p2  ;;  %p1711_p3 = por %p1710_p1, %p1709_p7 }
  0x37   : > { %p1705_p9 = pneg %p1704_p12 }
  0x39   : > { %p1712_p11 = pnand %p1711_p3, %p1705_p9 }
  0x3b   : > { %1715 = shalt.err (!%p1712_p11)
}
  0x3c   : > { %s2353_s18 = smov 64   ;;  %s2354_s12 = smov 4  }
  0x3d   : > { %1566 = dma.hbm_to_vmem [thread:$0]  (!%p2044_p13), %s2375_s1, 512, %s234_s21, [#allocation6], %s2353_s18, %s2353_s18, %s2354_s12  }
  0x3e   : > { %s2376_s4 = sld [smem:[#allocation21_spill]] }
  0x44   : > { %s1716_s20 = scalar_lea.hbm %s2376_s4, 8192 }
  0x45   : > { %p1717_p1 = scmp.ne.s32.totalorder %s2376_s4, %s1716_s20  ;;  %p1723_p9 = scmp.lt.u32.totalorder %s1716_s20, %s2376_s4 }
  0x47   : > { %p1719_p3 = pnand %p1717_p1, %p1690_p2 }
  0x49   : > { %p1720_p7 = pneg %p1719_p3 }
  0x4b   : > { %p1725_p11 = pnand %p1723_p9, %p1720_p7 }
  0x4d   : > { %1728 = shalt.err (!%p1725_p11)
}
  0x4e   : > { %s1729_s21 = scalar_lea.vmem %s2048_s27, 8192  ;;  %p1737_p6 = scmp.lt.s32.totalorder %s2048_s27, %s2048_s27 }
  0x4f   : > { %p1730_p0 = scmp.ne.s32.totalorder %s2048_s27, %s1729_s21  ;;  %p1738_p8 = scmp.lt.s32.totalorder %s1729_s21, %s1729_s21 }
  0x51   : > { %p1732_p4 = pnand %p1730_p0, %p1690_p2  ;;  %p1739_p10 = por %p1738_p8, %p1737_p6 }
  0x53   : > { %p1733_p5 = pneg %p1732_p4 }
  0x55   : > { %p1740_p12 = pnand %p1739_p10, %p1733_p5 }
  0x57   : > { %1743 = shalt.err (!%p1740_p12)
}
  0x58   : > { %s1906_s30 = smov 512   ;;  %s1907_s8 = smov 32  }
  0x59   : > { %1569 = dma.hbm_to_vmem [thread:$0]  (!%p2044_p13), %s2376_s4, 8192, %s2048_s27, [#allocation6], %s1906_s30, %s1906_s30, %s1907_s8  }
  0x5a   : > { %s33_s24 = sadd.s32 1, %s1892_s9  ;;  %s36_s15 = sadd.s32 1, %s1896_s10 }
  0x5b   : > { %p34_p2 = scmp.ge.s32.totalorder %s33_s24, 3  ;;  %s45_s13 = sadd.s32 1, %s1880_s29 }
  0x5c   : > { %p52_p1 = scmp.ne.s32.totalorder %s1880_s29, %s1876_s28  ;;  %p53_p3 = scmp.eq.s32.totalorder %s1900_s11, 0 }
  0x5d   : > { %s2409_s24 = smov (%p34_p2, %s33_s24), 0  ;;  %s2411_s15 = smov (!%p34_p2, %s36_s15), %s1896_s10 }
  0x5e   : > { %2377 = sst [smem:[#allocation18_spill]] %s2409_s24  ;;  %s41_s22 = ssub.s32 %s1892_s9, %s2409_s24 }
  0x5f   : > { %p2111_p7 = por %p53_p3, %p52_p1  ;;  %p38_p13 = scmp.ge.s32.totalorder %s2411_s15, 2 }
  0x60   : > { %p1580_p9 = scmp.lt.s32.totalorder %s1900_s11, 6  ;;  %s272_s27 = sand.u32 1, %s1880_s29  }
  0x61   : > { %s1446_s23 = sshll.u32 %s1892_s9, 1  ;;  %s2413_s15 = smov (%p38_p13, %s2411_s15), 0 }
  0x62   : > { %s1445_s21 = sshll.u32 %s272_s27, 3  ;;  %s40_s30 = ssub.s32 %s1896_s10, %s2413_s15 }
  0x63   : > { %s42_s8 = sor.u32 %s41_s22, %s40_s30  ;;  %p195_p11 = scmp.eq.s32.totalorder %s40_s30, 0 }
  0x64   : > { %p43_p0 = scmp.eq.s32.totalorder %s42_s8, 0  ;;  %s1550_s17 = smul.u32 6, %s1896_s10 }
  0x65   : > { %s2379_s7 = sadd.s32 1, %s1868_s26  ;;  %s276_s4 = scalar_lea.vmem [#allocation2], %s1445_s21 }
  0x66   : > { %s2126_s18 = scalar_select %p195_p11, %s1868_s26, %s2379_s7  }
  0x67   : > { %s2129_s12 = scalar_select %p43_p0, %s1880_s29, %s45_s13  }
  0x68   : > { %s282_s1 = sadd.s32 %s1550_s17, %s1446_s23  ;;  %s285_s24 = sshll.u32 %s276_s4, 4  ;;  %s2131_s24 = int_to_ptr.vmem [resolvable:$true] %s285_s24 }
  0x69   : > { %s1447_s9 = sshll.u32 %s282_s1, 6  ;;  %p2142_p4 = pnand %p1580_p9, %p2111_p7 }
  0x6a   : > { %s2136_s3 = scalar_lea.hbm %s2335_s0, %s1447_s9  ;;  %s2146_s1 = scalar_lea.sflag [#allocation3], %s272_s27 }
  0x6b   : > { %s1744_s4 = scalar_lea.hbm %s2136_s3, 128  ;;  %p1746_p6 = pneg %p2142_p4 }
  0x6c   : > { %p1745_p5 = scmp.ne.s32.totalorder %s2136_s3, %s1744_s4  ;;  %s1749_s9 = scalar_lea.hbm %s2335_s0, 768 }
  0x6d   : > { %p1750_p12 = scmp.lt.u32.totalorder %s2136_s3, %s2335_s0  ;;  %p1751_p2 = scmp.lt.u32.totalorder %s1749_s9, %s1744_s4 }
  0x6e   : > { %p1747_p8 = pnand %p1746_p6, %p1745_p5  ;;  %p1753_p3 = scmp.lt.u32.totalorder %s1744_s4, %s2136_s3 }
  0x6f   : > { %p1752_p1 = por %p1751_p2, %p1750_p12 }
  0x70   : > { %p1748_p10 = pneg %p1747_p8 }
  0x71   : > { %p1754_p7 = por %p1753_p3, %p1752_p1 }
  0x73   : > { %p1755_p13 = pnand %p1754_p7, %p1748_p10 }
  0x75   : > { %1758 = shalt.err (!%p1755_p13)
}
  0x76   : > { %s1759_s27 = scalar_lea.vmem %s2131_s24, 128  ;;  %s1908_s23 = smov [#allocation2]  }
  0x77   : > { %p1760_p9 = scmp.ne.s32.totalorder %s2131_s24, %s1759_s27  ;;  %s1764_s21 = sshll.u32 %s1908_s23, 4  ;;  %s1765_s21 = int_to_ptr.vmem [resolvable:$false] %s1764_s21 }
  0x78   : > { %s1766_s30 = scalar_lea.vmem %s1765_s21, 256  ;;  %p1767_p5 = scmp.lt.s32.totalorder %s2131_s24, %s1765_s21 }
  0x79   : > { %p1762_p11 = pnand %p1760_p9, %p1746_p6  ;;  %p1768_p8 = scmp.lt.s32.totalorder %s1766_s30, %s1759_s27 }
  0x7b   : > { %p1763_p0 = pneg %p1762_p11  ;;  %p1769_p12 = por %p1768_p8, %p1767_p5 }
  0x7d   : > { %p1770_p2 = pnand %p1769_p12, %p1763_p0 }
  0x7f   : > { %1773 = shalt.err (!%p1770_p2)
}
  0x80   : > { %s2381_s8 = smov 4   ;;  %s2382_s17 = smov 64  }
  0x81   : > { %1573 = dma.hbm_to_vmem [thread:$0]  (!%p2142_p4), %s2136_s3, 128, %s2131_s24, %s2146_s1, %s2382_s17, %s2382_s17, %s2381_s8  }
  0x82   : > { %p2383_p6 = scmp.ne.s32.totalorder %s2373_s19, 0 }
  0x83   : > { %s299_s7 = sand.u32 (!%p2383_p6), 1, %s1876_s28   ;;  %p2384_p10 = scmp.ne.s32.totalorder (!%p2383_p6), %s2368_s16, 0 }
  0x84   : > { %297 = sbr.rel (%p2383_p6) target bundleno = 712 (0x2c8), region = 48  ;;  %s2180_s4 = sshll.u32 (!%p2383_p6), %s299_s7, 3 }
  0x85   : > { %s300_s5 = scalar_lea.sflag (!%p2383_p6), [#allocation3], %s299_s7  ;;  %s303_s6 = scalar_lea.vmem (!%p2383_p6), [#allocation2], %s2180_s4 }
  0x8b   : > { %1847 = dma.done.wait (%p2384_p10), %s300_s5, 128  }
  0x8c   : > { %1849 = vsyncadd (%p2384_p10), %s300_s5, 4294967168  ;;  %p2385_p1 = scmp.ne.s32.totalorder %s2367_s14, 0 }
  0x8e   : > { %1851 = dma.done.wait (%p2385_p1), [#allocation6], 8704  }
  0x8f   : > { %1853 = vsyncadd (%p2385_p1), [#allocation6], 4294958592  ;;  %s339_s3 = sand.u32 1, %s1864_s25   ;;  %v1909_v0 = vmov 0.0   ;;  %vm1910_vm0 = vmmov 0   ;;  %v1683_v1 = vld [vmem:[#allocation5] sm:$0xff]  }
  0x90   : > { %s2194_s19 = sshll.u32 %s339_s3, 3  ;;  %1538 = vmatprep.subr.bf16.mxu0 %v1909_v0  ;;  %1546 = vmatprep.mubr.msk.bf16.mxu0 %vm1910_vm0, %v1909_v0  ;;  %v1684_v2 = vld [vmem:[#allocation5 + $0x8] sm:$0xff]   ;;  %v449_v3 = vld [vmem:[#allocation7] sm:$0xff]  ;;  %v1685_v5 = vld [vmem:[#allocation5 + $0x10] sm:$0xff]   ;;  %vm383_vm1 = vcmask 523264   ;;  %s2386_s1 = sld [smem:[#allocation20_spill]] }
  0x91   : > { %1539 = vmatpush3.bf16.msra.mxu0 %v1683_v1  ;;  %v453_v4 = vld [vmem:[#allocation7 + $0x20] sm:$0xff]  ;;  %v450_v12 = vld [vmem:[#allocation7 + $0x8] sm:$0xff]  ;;  %v1686_v16 = vld [vmem:[#allocation5 + $0x18] sm:$0xff]   ;;  %s2387_s20 = sld [smem:[#allocation22_spill]]  ;;  %s2388_s21 = sld [smem:[#allocation23_spill]] }
  0x92   : > { %1540 = vmatprep.subr.bf16.mxu0 %v1909_v0  ;;  %v1462_v6 = vcombine.high %v449_v3, %v453_v4  ;;  %v1461_v7 = vcombine.low %v449_v3, %v453_v4  ;;  %v457_v8 = vld [vmem:[#allocation7 + $0x40] sm:$0xff]  ;;  %v454_v13 = vld [vmem:[#allocation7 + $0x28] sm:$0xff]  ;;  %v1687_v23 = vld [vmem:[%s303_s6] sm:$0xff]   ;;  %s2255_s30 = scalar_lea.vmem [#allocation8], %s2194_s19  ;;  %s2389_s8 = sld [smem:[#allocation13_spill]] }
  0x93   : > { %v461_v9 = vld [vmem:[#allocation7 + $0x60] sm:$0xff]  ;;  %v1464_v18 = vcombine.high %v450_v12, %v454_v13  ;;  %v458_v21 = vld [vmem:[#allocation7 + $0x48] sm:$0xff]  ;;  %v1463_v25 = vcombine.low %v450_v12, %v454_v13 }
  0x94   : > { %v1470_v10 = vcombine.high %v457_v8, %v461_v9  ;;  %v465_v11 = vld [vmem:[#allocation7 + $0x80] sm:$0xff]  ;;  %833 = vmatprep.subr.bf16.mxu1 %v1462_v6  ;;  %v1469_v15 = vcombine.low %v457_v8, %v461_v9  ;;  %v462_v22 = vld [vmem:[#allocation7 + $0x68] sm:$0xff]  ;;  %v451_v6 = vld [vmem:[#allocation7 + $0x10] sm:$0xff] }
  0x95   : > { %1541 = vmatpush3.bf16.msra.mxu0 %v1684_v2  ;;  %v469_v14 = vld [vmem:[#allocation7 + $0xa0] sm:$0xff]  ;;  %834 = vmatpush1.bf16.msra.mxu1 %v1461_v7  ;;  %v1472_v27 = vcombine.high %v458_v21, %v462_v22  ;;  %v466_v30 = vld [vmem:[#allocation7 + $0x88] sm:$0xff]  ;;  %v1471_v33 = vcombine.low %v458_v21, %v462_v22  ;;  %v455_v7 = vld [vmem:[#allocation7 + $0x30] sm:$0xff] }
  0x96   : > { %1542 = vmatprep.subr.bf16.mxu0 %v1909_v0  ;;  %835 = vmatprep.subr.bf16.mxu1 %v1470_v10  ;;  %v1478_v17 = vcombine.high %v465_v11, %v469_v14  ;;  %v473_v19 = vld [vmem:[#allocation7 + $0xc0] sm:$0xff]  ;;  %v1477_v24 = vcombine.low %v465_v11, %v469_v14  ;;  %v470_v31 = vld [vmem:[#allocation7 + $0xa8] sm:$0xff]  ;;  %v452_v8 = vld [vmem:[#allocation7 + $0x18] sm:$0xff]  ;;  %v1466_v9 = vcombine.high %v451_v6, %v455_v7  ;;  %v1911_v14 = vmov 0  }
  0x97   : > { %v477_v20 = vld [vmem:[#allocation7 + $0xe0] sm:$0xff]  ;;  %v1480_v35 = vcombine.high %v466_v30, %v470_v31  ;;  %v474_v38 = vld [vmem:[#allocation7 + $0xc8] sm:$0xff]  ;;  %v1479_v41 = vcombine.low %v466_v30, %v470_v31  ;;  %v456_v10 = vld [vmem:[#allocation7 + $0x38] sm:$0xff]  ;;  %v1465_v11 = vcombine.low %v451_v6, %v455_v7  ;;  %865 = vmatprep.mubr.bf16.mxu1 %v1911_v14 }
  0x98   : > { %v1486_v26 = vcombine.high %v473_v19, %v477_v20  ;;  %v481_v28 = vld [vmem:[#allocation7 + $0x100] sm:$0xff]  ;;  %v1485_v32 = vcombine.low %v473_v19, %v477_v20  ;;  %v478_v39 = vld [vmem:[#allocation7 + $0xe8] sm:$0xff]  ;;  %v1467_v12 = vcombine.low %v452_v8, %v456_v10  ;;  %v1468_v13 = vcombine.high %v452_v8, %v456_v10  ;;  %v507_v10 = vld [vmem:[#allocation7 + $0x1d0] sm:$0xff]  ;;  %p1525_p4 = scmp.ne.s32.totalorder %s2389_s8, 0 }
  0x99   : > { %1543 = vmatpush3.bf16.msra.mxu0 %v1685_v5  ;;  %836 = vmatpush1.bf16.msra.mxu1 %v1469_v15  ;;  %v485_v29 = vld [vmem:[#allocation7 + $0x120] sm:$0xff]  ;;  %v1488_v43 = vcombine.high %v474_v38, %v478_v39  ;;  %v482_v44 = vld [vmem:[#allocation7 + $0x108] sm:$0xff]  ;;  %v1487_v47 = vcombine.low %v474_v38, %v478_v39  ;;  %v1459_v15 = vld [vmem:[%s2337_s2] ss:$0 sm:$0xff] }
  0x9a   : > { %1544 = vmatprep.subr.bf16.mxu0 %v1909_v0  ;;  %837 = vmatprep.subr.bf16.mxu1 %v1478_v17  ;;  %v1494_v34 = vcombine.high %v481_v28, %v485_v29  ;;  %v489_v36 = vld [vmem:[#allocation7 + $0x140] sm:$0xff]  ;;  %v1493_v40 = vcombine.low %v481_v28, %v485_v29  ;;  %v486_v45 = vld [vmem:[#allocation7 + $0x128] sm:$0xff]  ;;  %v1460_v17 = vld [vmem:[%s2386_s1] ss:$0 sm:$0xff] }
  0x9b   : > { %v493_v37 = vld [vmem:[#allocation7 + $0x160] sm:$0xff]  ;;  %v1496_v48 = vcombine.high %v482_v44, %v486_v45  ;;  %v490_v49 = vld [vmem:[#allocation7 + $0x148] sm:$0xff]  ;;  %v1495_v51 = vcombine.low %v482_v44, %v486_v45  ;;  %v464_v28 = vld [vmem:[#allocation7 + $0x78] sm:$0xff] }
  0x9c   : > { %v1502_v42 = vcombine.high %v489_v36, %v493_v37  ;;  %v1501_v46 = vcombine.low %v489_v36, %v493_v37  ;;  %v494_v50 = vld [vmem:[#allocation7 + $0x168] sm:$0xff]  ;;  %v497_v54 = vld [vmem:[#allocation7 + $0x180] sm:$0xff]  ;;  %v468_v36 = vld [vmem:[#allocation7 + $0x98] sm:$0xff] }
  0x9d   : > { %1545 = vmatpush3.bf16.msra.mxu0 %v1686_v16  ;;  %838 = vmatpush1.bf16.msra.mxu1 %v1477_v24  ;;  %v1504_v52 = vcombine.high %v490_v49, %v494_v50  ;;  %v1503_v53 = vcombine.low %v490_v49, %v494_v50  ;;  %v501_v55 = vld [vmem:[#allocation7 + $0x1a0] sm:$0xff]  ;;  %v498_v56 = vld [vmem:[#allocation7 + $0x188] sm:$0xff]  ;;  %v472_v37 = vld [vmem:[#allocation7 + $0xb8] sm:$0xff] }
  0x9e   : > { %876 = vmatprep.subr.bf16.mxu0 %v1464_v18  ;;  %839 = vmatprep.subr.bf16.mxu1 %v1486_v26  ;;  %v1510_v57 = vcombine.high %v497_v54, %v501_v55  ;;  %v502_v58 = vld [vmem:[#allocation7 + $0x1a8] sm:$0xff]  ;;  %v1509_v61 = vcombine.low %v497_v54, %v501_v55  ;;  %v505_v62 = vld [vmem:[#allocation7 + $0x1c0] sm:$0xff]  ;;  %v463_v26 = vld [vmem:[#allocation7 + $0x70] sm:$0xff] }
  0x9f   : > { %v1511_v59 = vcombine.low %v498_v56, %v502_v58  ;;  %v1512_v60 = vcombine.high %v498_v56, %v502_v58  ;;  %v509_v63 = vld [vmem:[#allocation7 + $0x1e0] sm:$0xff]  ;;  %v506_v0 = vld [vmem:[#allocation7 + $0x1c8] sm:$0xff]  ;;  %v476_v44 = vld [vmem:[#allocation7 + $0xd8] sm:$0xff] }
  0xa0   : > { %1547 = vmatmul.mubr.msk.bf16.vlgmr.msra.gmra.mrb[0].mxu0 %vm383_vm1, %v1687_v23  ;;  %v1518_v1 = vcombine.high %v505_v62, %v509_v63  ;;  %v510_v2 = vld [vmem:[#allocation7 + $0x1e8] sm:$0xff]  ;;  %v1517_v5 = vcombine.low %v505_v62, %v509_v63  ;;  %v480_v45 = vld [vmem:[#allocation7 + $0xf8] sm:$0xff]  ;;  %v483_v50 = vld [vmem:[#allocation7 + $0x110] sm:$0xff] }
  0xa1   : > { %877 = vmatpush1.bf16.msra.mxu0 %v1463_v25  ;;  %840 = vmatpush1.bf16.msra.mxu1 %v1485_v32  ;;  %v1519_v3 = vcombine.low %v506_v0, %v510_v2  ;;  %v1520_v4 = vcombine.high %v506_v0, %v510_v2  ;;  %v459_v25 = vld [vmem:[#allocation7 + $0x50] sm:$0xff]  ;;  %v1492_v49 = vcombine.high %v476_v44, %v480_v45 }
  0xa2   : > { %878 = vmatprep.subr.bf16.mxu0 %v1472_v27  ;;  %841 = vmatprep.subr.bf16.mxu1 %v1494_v34  ;;  %v460_v27 = vld [vmem:[#allocation7 + $0x58] sm:$0xff]  ;;  %v1474_v32 = vcombine.high %v459_v25, %v463_v26  ;;  %v467_v34 = vld [vmem:[#allocation7 + $0x90] sm:$0xff]  ;;  %v1473_v38 = vcombine.low %v459_v25, %v463_v26  ;;  %v1491_v55 = vcombine.low %v476_v44, %v480_v45 }
  0xa3   : > { %908 = vmatprep.mubr.bf16.mxu0 %v1911_v14  ;;  %v1475_v39 = vcombine.low %v460_v27, %v464_v28  ;;  %v491_v58 = vld [vmem:[#allocation7 + $0x150] sm:$0xff] }
  0xa4   : > { %v499_v2 = vld [vmem:[#allocation7 + $0x190] sm:$0xff] }
  0xa5   : > { %879 = vmatpush1.bf16.msra.mxu0 %v1471_v33  ;;  %842 = vmatpush1.bf16.msra.mxu1 %v1493_v40  ;;  %v1476_v33 = vcombine.high %v460_v27, %v464_v28  ;;  %v2224_v27 = vld [vmem:[%s2388_s21] sm:$0xff] }
  0xa6   : > { %880 = vmatprep.subr.bf16.mxu0 %v1480_v35  ;;  %843 = vmatprep.subr.bf16.mxu1 %v1502_v42  ;;  %v471_v35 = vld [vmem:[#allocation7 + $0xb0] sm:$0xff] }
  0xa7   : > { %v1482_v40 = vcombine.high %v467_v34, %v471_v35  ;;  %v475_v42 = vld [vmem:[#allocation7 + $0xd0] sm:$0xff] }
  0xa9   : > { %881 = vmatpush1.bf16.msra.mxu0 %v1479_v41  ;;  %844 = vmatpush1.bf16.msra.mxu1 %v1501_v46  ;;  %v1484_v41 = vcombine.high %v468_v36, %v472_v37  ;;  %v1481_v46 = vcombine.low %v467_v34, %v471_v35 }
  0xaa   : > { %882 = vmatprep.subr.bf16.mxu0 %v1488_v43  ;;  %845 = vmatprep.subr.bf16.mxu1 %v1510_v57  ;;  %v479_v43 = vld [vmem:[#allocation7 + $0xf0] sm:$0xff] }
  0xab   : > { %v1489_v54 = vcombine.low %v475_v42, %v479_v43 }
  0xad   : > { %883 = vmatpush1.bf16.msra.mxu0 %v1487_v47  ;;  %846 = vmatpush1.bf16.msra.mxu1 %v1509_v61  ;;  %v1483_v47 = vcombine.low %v468_v36, %v472_v37  ;;  %v496_v61 = vld [vmem:[#allocation7 + $0x178] sm:$0xff] }
  0xae   : > { %884 = vmatprep.subr.bf16.mxu0 %v1496_v48  ;;  %847 = vmatprep.subr.bf16.mxu1 %v1518_v1  ;;  %v1490_v48 = vcombine.high %v475_v42, %v479_v43 }
  0xb1   : > { %885 = vmatpush1.bf16.msra.mxu0 %v1495_v51  ;;  %848 = vmatpush1.bf16.msra.mxu1 %v1517_v5  ;;  %v487_v51 = vld [vmem:[#allocation7 + $0x130] sm:$0xff]  ;;  %v504_v5 = vld [vmem:[#allocation7 + $0x1b8] sm:$0xff] }
  0xb2   : > { %886 = vmatprep.subr.bf16.mxu0 %v1504_v52  ;;  %919 = vmatprep.subr.bf16.mxu1 %v1466_v9  ;;  %v484_v52 = vld [vmem:[#allocation7 + $0x118] sm:$0xff]  ;;  %v1498_v56 = vcombine.high %v483_v50, %v487_v51  ;;  %v1497_v62 = vcombine.low %v483_v50, %v487_v51 }
  0xb5   : > { %887 = vmatpush1.bf16.msra.mxu0 %v1503_v53  ;;  %v488_v53 = vld [vmem:[#allocation7 + $0x138] sm:$0xff] }
  0xb6   : > { %888 = vmatprep.subr.bf16.mxu0 %v1512_v60  ;;  %v1500_v57 = vcombine.high %v484_v52, %v488_v53  ;;  %v492_v60 = vld [vmem:[#allocation7 + $0x158] sm:$0xff]  ;;  %v1499_v63 = vcombine.low %v484_v52, %v488_v53 }
  0xb7   : > { %v1508_v1 = vcombine.high %v492_v60, %v496_v61  ;;  %v1507_v7 = vcombine.low %v492_v60, %v496_v61 }
  0xb9   : > { %889 = vmatpush1.bf16.msra.mxu0 %v1511_v59  ;;  %v495_v59 = vld [vmem:[#allocation7 + $0x170] sm:$0xff] }
  0xba   : > { %890 = vmatprep.subr.bf16.mxu0 %v1520_v4  ;;  %v1506_v0 = vcombine.high %v491_v58, %v495_v59  ;;  %v500_v4 = vld [vmem:[#allocation7 + $0x198] sm:$0xff]  ;;  %v1505_v6 = vcombine.low %v491_v58, %v495_v59 }
  0xbb   : > { %v1516_v9 = vcombine.high %v500_v4, %v504_v5 }
  0xbd   : > { %891 = vmatpush1.bf16.msra.mxu0 %v1519_v3  ;;  %v503_v3 = vld [vmem:[#allocation7 + $0x1b0] sm:$0xff] }
  0xbe   : > { %962 = vmatprep.subr.bf16.mxu0 %v1468_v13  ;;  %v1514_v8 = vcombine.high %v499_v2, %v503_v3  ;;  %v512_v13 = vld [vmem:[#allocation7 + $0x1f8] sm:$0xff] }
 0x173   : > { %v421_v16 = vpop.f32.mrb[0].mxu0 }
 0x174   : > { %v435_v18 = vmul.f32 %v1459_v15, %v421_v16  ;;  %v1548_v19 = vpop.f32.mrb[1].mxu0 }
 0x175   : > { %v424_v20 = vpop.f32.mrb[2].mxu0 }
 0x176   : > { %v444_v21 = vadd.f32 %v1460_v17, %v435_v18  ;;  %v436_v22 = vmul.f32 %v1459_v15, %v424_v20  ;;  %v1549_v23 = vpop.f32.mrb[3].mxu0  ;;  %v1515_v15 = vcombine.low %v500_v4, %v504_v5  ;;  %v1007_v20 = vlaneseq }
 0x178   : > { %v445_v24 = vadd.f32 %v1460_v17, %v436_v22  ;;  %v446_v29 = vmax.f32 %v444_v21, 0.0  ;;  %v2210_v21 = vshrl.u32 %v1007_v20, 7 }
 0x17a   : > { %v447_v30 = vmax.f32 %v445_v24, 0.0  ;;  %v1009_v22 = vsub.s32 0, %v2210_v21  ;;  %v1017_v23 = vsub.s32 2, %v2210_v21  ;;  %v2217_v24 = vld [vmem:[%s2387_s20] sm:$0xff]  ;;  %v1013_v25 = vsub.s32 1, %v2210_v21 }
 0x17b   : > { %v1021_v26 = vsub.s32 3, %v2210_v21 }
 0x17c   : > { %v2204_v31 = vpack.c.bf16 %v447_v30, %v446_v29  ;;  %v1010_v28 = vrot.slane %v2217_v24, %v1009_v22  ;;  %v1018_v29 = vrot.slane %v2217_v24, %v1017_v23  ;;  %v1014_v30 = vrot.slane %v2217_v24, %v1013_v25 }
 0x17d   : > { %v1072_v36 = vrot.slane %v2224_v27, %v1013_v25  ;;  %v1080_v37 = vrot.slane %v2224_v27, %v1021_v26 }
 0x17e   : > { %866 = vmatmul.mubr.bf16.vlgmr.msra.gmra.mrb[0].mxu1 %v2204_v31  ;;  %909 = vmatmul.mubr.bf16.vlgmr.msra.gmra.mrb[4].mxu0 %v2204_v31 }
 0x17f   : > { %920 = vmatpush1.bf16.msra.mxu1 %v1465_v11  ;;  %963 = vmatpush1.bf16.msra.mxu0 %v1467_v12  ;;  %v511_v11 = vld [vmem:[#allocation7 + $0x1f0] sm:$0xff]  ;;  %v508_v12 = vld [vmem:[#allocation7 + $0x1d8] sm:$0xff] }
 0x180   : > { %921 = vmatprep.subr.bf16.mxu1 %v1474_v32  ;;  %964 = vmatprep.subr.bf16.mxu0 %v1476_v33  ;;  %v1522_v16 = vcombine.high %v507_v10, %v511_v11  ;;  %v1524_v17 = vcombine.high %v508_v12, %v512_v13  ;;  %v1521_v18 = vcombine.low %v507_v10, %v511_v11 }
 0x181   : > { %951 = vmatprep.mubr.bf16.mxu1 %v1911_v14  ;;  %994 = vmatprep.mubr.bf16.mxu0 %v1911_v14  ;;  %v1513_v14 = vcombine.low %v499_v2, %v503_v3  ;;  %v1523_v19 = vcombine.low %v508_v12, %v512_v13  ;;  %v1068_v32 = vrot.slane %v2224_v27, %v1009_v22 }
 0x182   : > { %v1076_v33 = vrot.slane %v2224_v27, %v1017_v23 }
 0x183   : > { %922 = vmatpush1.bf16.msra.mxu1 %v1473_v38  ;;  %965 = vmatpush1.bf16.msra.mxu0 %v1475_v39 }
 0x184   : > { %923 = vmatprep.subr.bf16.mxu1 %v1482_v40  ;;  %966 = vmatprep.subr.bf16.mxu0 %v1484_v41 }
 0x187   : > { %924 = vmatpush1.bf16.msra.mxu1 %v1481_v46  ;;  %967 = vmatpush1.bf16.msra.mxu0 %v1483_v47 }
 0x188   : > { %925 = vmatprep.subr.bf16.mxu1 %v1490_v48  ;;  %968 = vmatprep.subr.bf16.mxu0 %v1492_v49 }
 0x18b   : > { %926 = vmatpush1.bf16.msra.mxu1 %v1489_v54  ;;  %969 = vmatpush1.bf16.msra.mxu0 %v1491_v55 }
 0x18c   : > { %927 = vmatprep.subr.bf16.mxu1 %v1498_v56  ;;  %970 = vmatprep.subr.bf16.mxu0 %v1500_v57 }
 0x18f   : > { %928 = vmatpush1.bf16.msra.mxu1 %v1497_v62  ;;  %971 = vmatpush1.bf16.msra.mxu0 %v1499_v63 }
 0x190   : > { %929 = vmatprep.subr.bf16.mxu1 %v1506_v0  ;;  %972 = vmatprep.subr.bf16.mxu0 %v1508_v1 }
 0x193   : > { %930 = vmatpush1.bf16.msra.mxu1 %v1505_v6  ;;  %973 = vmatpush1.bf16.msra.mxu0 %v1507_v7 }
 0x194   : > { %931 = vmatprep.subr.bf16.mxu1 %v1514_v8  ;;  %974 = vmatprep.subr.bf16.mxu0 %v1516_v9 }
 0x197   : > { %932 = vmatpush1.bf16.msra.mxu1 %v1513_v14  ;;  %975 = vmatpush1.bf16.msra.mxu0 %v1515_v15 }
 0x198   : > { %933 = vmatprep.subr.bf16.mxu1 %v1522_v16  ;;  %976 = vmatprep.subr.bf16.mxu0 %v1524_v17 }
 0x19b   : > { %934 = vmatpush1.bf16.msra.mxu1 %v1521_v18  ;;  %977 = vmatpush1.bf16.msra.mxu0 %v1523_v19 }
 0x19e   : > { %952 = vmatmul.mubr.bf16.vlgmr.msra.gmra.mrb[4].mxu1 %v2204_v31  ;;  %995 = vmatmul.mubr.bf16.vlgmr.msra.gmra.mrb[8].mxu0 %v2204_v31  ;;  %v1022_v31 = vrot.slane %v2217_v24, %v1021_v26 }
 0x251   : > { %v867_v34 = vpop.f32.mrb[0].mxu1  ;;  %v910_v35 = vpop.f32.mrb[4].mxu0 }
 0x252   : > { %v1047_v38 = vmul.f32 %v1010_v28, %v867_v34  ;;  %v1049_v39 = vmul.f32 %v1018_v29, %v910_v35  ;;  %v869_v40 = vpop.f32.mrb[1].mxu1  ;;  %v912_v41 = vpop.f32.mrb[5].mxu0  ;;  %v1025_v35 = vsub.s32 4, %v2210_v21 }
 0x253   : > { %v1048_v42 = vmul.f32 %v1014_v30, %v869_v40  ;;  %v1050_v43 = vmul.f32 %v1022_v31, %v912_v41  ;;  %v871_v44 = vpop.f32.mrb[2].mxu1  ;;  %v914_v45 = vpop.f32.mrb[6].mxu0 }
 0x254   : > { %v1105_v46 = vadd.f32 %v1068_v32, %v1047_v38  ;;  %v1107_v47 = vadd.f32 %v1076_v33, %v1049_v39  ;;  %v1055_v48 = vmul.f32 %v1010_v28, %v871_v44  ;;  %v1057_v49 = vmul.f32 %v1018_v29, %v914_v45  ;;  %v873_v50 = vpop.f32.mrb[3].mxu1  ;;  %v916_v51 = vpop.f32.mrb[7].mxu0 }
 0x255   : > { %v1106_v52 = vadd.f32 %v1072_v36, %v1048_v42  ;;  %v1108_v53 = vadd.f32 %v1080_v37, %v1050_v43  ;;  %v1056_v54 = vmul.f32 %v1014_v30, %v873_v50  ;;  %v1058_v55 = vmul.f32 %v1022_v31, %v916_v51 }
 0x256   : > { %v1113_v56 = vadd.f32 %v1068_v32, %v1055_v48  ;;  %v1115_v57 = vadd.f32 %v1076_v33, %v1057_v49  ;;  %v1121_v60 = vmax.f32 %v1105_v46, 0.0  ;;  %v1123_v61 = vmax.f32 %v1107_v47, 0.0 }
 0x257   : > { %v1114_v58 = vadd.f32 %v1072_v36, %v1056_v54  ;;  %v1116_v59 = vadd.f32 %v1080_v37, %v1058_v55  ;;  %v1122_v0 = vmax.f32 %v1106_v52, 0.0  ;;  %v1124_v1 = vmax.f32 %v1108_v53, 0.0 }
 0x258   : > { %v1129_v62 = vmax.f32 %v1113_v56, 0.0  ;;  %v1131_v63 = vmax.f32 %v1115_v57, 0.0  ;;  %v1033_v36 = vsub.s32 6, %v2210_v21  ;;  %v1029_v37 = vsub.s32 5, %v2210_v21 }
 0x259   : > { %v1130_v2 = vmax.f32 %v1114_v58, 0.0  ;;  %v1132_v3 = vmax.f32 %v1116_v59, 0.0  ;;  %v1037_v38 = vsub.s32 7, %v2210_v21  ;;  %v1026_v39 = vrot.slane %v2217_v24, %v1025_v35 }
 0x25a   : > { %v1137_v4 = vmax.f32 %v1121_v60, %v1129_v62  ;;  %v1151_v5 = vmax.f32 %v1123_v61, %v1131_v63  ;;  %v1034_v40 = vrot.slane %v2217_v24, %v1033_v36  ;;  %v1030_v41 = vrot.slane %v2217_v24, %v1029_v37 }
 0x25b   : > { %v1144_v6 = vmax.f32 %v1122_v0, %v1130_v2  ;;  %v1158_v7 = vmax.f32 %v1124_v1, %v1132_v3  ;;  %v1038_v42 = vrot.slane %v2217_v24, %v1037_v38  ;;  %v1084_v43 = vrot.slane %v2224_v27, %v1025_v35 }
 0x25c   : > { %v1138_v8 = vrot.slane %v1137_v4, 4  ;;  %v1152_v9 = vrot.slane %v1151_v5, 4  ;;  %v1092_v44 = vrot.slane %v2224_v27, %v1033_v36  ;;  %v1088_v47 = vrot.slane %v2224_v27, %v1029_v37 }
 0x25d   : > { %v1145_v10 = vrot.slane %v1144_v6, 4  ;;  %v1159_v11 = vrot.slane %v1158_v7, 4  ;;  %v1096_v48 = vrot.slane %v2224_v27, %v1037_v38 }
 0x25e   : > { %v1139_v12 = vmax.f32 %v1137_v4, %v1138_v8  ;;  %v1153_v13 = vmax.f32 %v1151_v5, %v1152_v9 }
 0x25f   : > { %v1146_v14 = vmax.f32 %v1144_v6, %v1145_v10  ;;  %v1160_v15 = vmax.f32 %v1158_v7, %v1159_v11 }
 0x260   : > { %v1140_v16 = vrot.slane %v1139_v12, 2  ;;  %v1154_v17 = vrot.slane %v1153_v13, 2 }
 0x261   : > { %v1147_v18 = vrot.slane %v1146_v14, 2  ;;  %v1161_v19 = vrot.slane %v1160_v15, 2 }
 0x262   : > { %v1141_v20 = vmax.f32 %v1139_v12, %v1140_v16  ;;  %v1155_v22 = vmax.f32 %v1153_v13, %v1154_v17 }
 0x263   : > { %v1148_v23 = vmax.f32 %v1146_v14, %v1147_v18  ;;  %v1162_v25 = vmax.f32 %v1160_v15, %v1161_v19 }
 0x264   : > { %v1142_v26 = vrot.slane %v1141_v20, 1  ;;  %v1156_v28 = vrot.slane %v1155_v22, 1 }
 0x265   : > { %v1149_v29 = vrot.slane %v1148_v23, 1  ;;  %v1163_v30 = vrot.slane %v1162_v25, 1 }
 0x266   : > { %v2234_v31 = vmax.f32 %v1141_v20, %v1142_v26  ;;  %v2236_v32 = vmax.f32 %v1155_v22, %v1156_v28 }
 0x267   : > { %v2238_v33 = vmax.f32 %v1148_v23, %v1149_v29  ;;  %v2240_v34 = vmax.f32 %v1162_v25, %v1163_v30 }
 0x271   : > { %v953_v45 = vpop.f32.mrb[4].mxu1  ;;  %v996_v46 = vpop.f32.mrb[8].mxu0 }
 0x272   : > { %v1051_v49 = vmul.f32 %v1026_v39, %v953_v45  ;;  %v1053_v50 = vmul.f32 %v1034_v40, %v996_v46  ;;  %v955_v51 = vpop.f32.mrb[5].mxu1  ;;  %v998_v52 = vpop.f32.mrb[9].mxu0 }
 0x273   : > { %v1052_v53 = vmul.f32 %v1030_v41, %v955_v51  ;;  %v1054_v54 = vmul.f32 %v1038_v42, %v998_v52  ;;  %v957_v55 = vpop.f32.mrb[6].mxu1  ;;  %v1000_v56 = vpop.f32.mrb[10].mxu0  ;;  %v1206_v51 = vcombine.low (!%p1525_p4), %v2236_v32, %v2240_v34 }
 0x274   : > { %v1109_v57 = vadd.f32 %v1084_v43, %v1051_v49  ;;  %v1111_v24 = vadd.f32 %v1092_v44, %v1053_v50  ;;  %v1059_v58 = vmul.f32 %v1026_v39, %v957_v55  ;;  %v1061_v59 = vmul.f32 %v1034_v40, %v1000_v56  ;;  %v959_v60 = vpop.f32.mrb[7].mxu1  ;;  %v1002_v61 = vpop.f32.mrb[11].mxu0 }
 0x275   : > { %v1110_v62 = vadd.f32 %v1088_v47, %v1052_v53  ;;  %v1112_v63 = vadd.f32 %v1096_v48, %v1054_v54  ;;  %v1060_v0 = vmul.f32 %v1030_v41, %v959_v60  ;;  %v1062_v1 = vmul.f32 %v1038_v42, %v1002_v61 }
 0x276   : > { %v1117_v2 = vadd.f32 %v1084_v43, %v1059_v58  ;;  %v1119_v27 = vadd.f32 %v1092_v44, %v1061_v59  ;;  %v1125_v5 = vmax.f32 %v1109_v57, 0.0  ;;  %v1127_v6 = vmax.f32 %v1111_v24, 0.0 }
 0x277   : > { %v1118_v3 = vadd.f32 %v1088_v47, %v1060_v0  ;;  %v1120_v4 = vadd.f32 %v1096_v48, %v1062_v1  ;;  %v1126_v9 = vmax.f32 %v1110_v62, 0.0  ;;  %v1128_v10 = vmax.f32 %v1112_v63, 0.0 }
 0x278   : > { %v1133_v7 = vmax.f32 %v1117_v2, 0.0  ;;  %v1135_v8 = vmax.f32 %v1119_v27, 0.0  ;;  %v1912_v48 = vmov (!%p1525_p4), 1966171168   ;;  %v1205_v50 = vcombine.low (!%p1525_p4), %v2234_v31, %v2238_v33 }
 0x279   : > { %v1134_v11 = vmax.f32 %v1118_v3, 0.0  ;;  %v1136_v12 = vmax.f32 %v1120_v4, 0.0  ;;  %v1210_v49 = vunpack.c.l.s4 (!%p1525_p4), %v1912_v48 }
 0x27a   : > { %v1165_v13 = vmax.f32 %v1125_v5, %v1133_v7  ;;  %v1179_v14 = vmax.f32 %v1127_v6, %v1135_v8 }
 0x27b   : > { %v1172_v15 = vmax.f32 %v1126_v9, %v1134_v11  ;;  %v1186_v16 = vmax.f32 %v1128_v10, %v1136_v12  ;;  %v1211_v54 = vunpack.c.0.s8 (!%p1525_p4), %v1210_v49 }
 0x27c   : > { %v1166_v17 = vrot.slane %v1165_v13, 4  ;;  %v1180_v18 = vrot.slane %v1179_v14, 4 }
 0x27d   : > { %v1173_v19 = vrot.slane %v1172_v15, 4  ;;  %v1187_v20 = vrot.slane %v1186_v16, 4  ;;  %v1214_v55 = vsub.s32 (!%p1525_p4), %v1211_v54, %v2210_v21 }
 0x27e   : > { %v1167_v22 = vmax.f32 %v1165_v13, %v1166_v17  ;;  %v1181_v23 = vmax.f32 %v1179_v14, %v1180_v18 }
 0x27f   : > { %v1174_v25 = vmax.f32 %v1172_v15, %v1173_v19  ;;  %v1188_v26 = vmax.f32 %v1186_v16, %v1187_v20  ;;  %v1215_v56 = vrot.slane (!%p1525_p4), %v1205_v50, %v1214_v55  ;;  %v1222_v57 = vrot.slane (!%p1525_p4), %v1206_v51, %v1214_v55 }
 0x280   : > { %v1168_v28 = vrot.slane %v1167_v22, 2  ;;  %v1182_v29 = vrot.slane %v1181_v23, 2 }
 0x281   : > { %v1175_v30 = vrot.slane %v1174_v25, 2  ;;  %v1189_v35 = vrot.slane %v1188_v26, 2  ;;  %1196 = sbr.rel (%p1525_p4) target bundleno = 660 (0x294), region = 64  ;;  %v1237_v59 = vcombine.low (!%p1525_p4), %v1215_v56, %v1222_v57 }
 0x282   : > { %v1169_v36 = vmax.f32 %v1167_v22, %v1168_v28  ;;  %v1183_v37 = vmax.f32 %v1181_v23, %v1182_v29 }
 0x283   : > { %v1176_v38 = vmax.f32 %v1174_v25, %v1175_v30  ;;  %v1190_v39 = vmax.f32 %v1188_v26, %v1189_v35  ;;  %v1245_v61 = vrot.slane (!%p1525_p4), %v1237_v59, %v1214_v55 }
 0x284   : > { %v1170_v40 = vrot.slane %v1169_v36, 1  ;;  %v1184_v41 = vrot.slane %v1183_v37, 1 }
 0x285   : > { %v1177_v42 = vrot.slane %v1176_v38, 1  ;;  %v1191_v43 = vrot.slane %v1190_v39, 1 }
 0x286   : > { %v1171_v44 = vmax.f32 %v1169_v36, %v1170_v40  ;;  %v1185_v45 = vmax.f32 %v1183_v37, %v1184_v41 }
 0x287   : > { %v1178_v46 = vmax.f32 %v1176_v38, %v1177_v42  ;;  %v1192_v47 = vmax.f32 %v1190_v39, %v1191_v43 }
 0x289   : > { %v1207_v52 = vcombine.low %v1171_v44, %v1178_v46  ;;  %v1208_v53 = vcombine.low %v1185_v45, %v1192_v47 }
 0x28b   : > { %v1229_v24 = vrot.slane %v1207_v52, %v1214_v55  ;;  %v1236_v58 = vrot.slane %v1208_v53, %v1214_v55 }
 0x28d   : > { %v1238_v60 = vcombine.low %v1229_v24, %v1236_v58 }
 0x28f   : > { %v1252_v62 = vrot.slane %v1238_v60, %v1214_v55 }
 0x291   : > { %v1253_v63 = vcombine.low %v1245_v61, %v1252_v62 }
 0x293   : > { %1255 = vst [vmem:[%s2255_s30] sm:$0xff] %v1253_v63 }
 0x294 PF: > { %s2390_s17 = sld [smem:[#allocation13_spill]] }
 0x29a   : > { %p1526_p3 = scmp.le.s32.totalorder %s2390_s17, 0 }
 0x29b   : > { %v1913_v0 = vmov (!%p1526_p3), 1966171168   ;;  %v1269_v2 = vcombine.low (!%p1526_p3), %v2234_v31, %v2238_v33  ;;  %v1270_v27 = vcombine.low (!%p1526_p3), %v2236_v32, %v2240_v34  ;;  %v1271_v3 = vcombine.low (!%p1526_p3), %v1171_v44, %v1178_v46  ;;  %v1260_v15 = vld [vmem:[%s2255_s30] sm:$0xff] (!%p1526_p3) }
 0x29c   : > { %1259 = sbr.rel (%p1526_p3) target bundleno = 685 (0x2ad), region = 68  ;;  %v1274_v1 = vunpack.c.l.s4 (!%p1526_p3), %v1913_v0  ;;  %v1272_v4 = vcombine.low (!%p1526_p3), %v1185_v45, %v1192_v47 }
 0x29e   : > { %v1275_v5 = vunpack.c.0.s8 (!%p1526_p3), %v1274_v1 }
 0x2a0   : > { %v1278_v6 = vsub.s32 (!%p1526_p3), %v1275_v5, %v2210_v21 }
 0x2a2   : > { %v1279_v7 = vrot.slane (!%p1526_p3), %v1269_v2, %v1278_v6  ;;  %v1286_v8 = vrot.slane (!%p1526_p3), %v1270_v27, %v1278_v6  ;;  %v1293_v9 = vrot.slane (!%p1526_p3), %v1271_v3, %v1278_v6  ;;  %v1300_v10 = vrot.slane (!%p1526_p3), %v1272_v4, %v1278_v6 }
 0x2a4   : > { %v1301_v11 = vcombine.low %v1279_v7, %v1286_v8  ;;  %v1302_v12 = vcombine.low %v1293_v9, %v1300_v10 }
 0x2a6   : > { %v1309_v13 = vrot.slane %v1301_v11, %v1278_v6  ;;  %v1316_v14 = vrot.slane %v1302_v12, %v1278_v6 }
 0x2a8   : > { %v1317_v16 = vcombine.low %v1309_v13, %v1316_v14 }
 0x2aa   : > { %v1319_v31 = vmax.f32 %v1260_v15, %v1317_v16 }
 0x2ac   : > { %1320 = vst [vmem:[%s2255_s30] sm:$0xff] %v1319_v31 }
 0x2ad PF: > { %s2391_s7 = sld [smem:[#allocation14_spill]]  ;;  %s2392_s4 = sld [smem:[#allocation16_spill]] }
 0x2ae   : > { %s2393_s14 = sld [smem:[#allocation24_spill]]  ;;  %s1336_s24 = sshll.u32 %s2255_s30, 4  ;;  %s1337_s24 = int_to_ptr.vmem [resolvable:$true] %s1336_s24 }
 0x2af   : > { %s1322_s13 = scalar_lea.sflag [#allocation4], %s339_s3  ;;  %s1774_s1 = scalar_lea.vmem %s1337_s24, 128 }
 0x2b0   : > { %p1775_p7 = scmp.ne.s32.totalorder %s1337_s24, %s1774_s1  ;;  %s1914_s9 = smov [#allocation8]  }
 0x2b1   : > { %s1778_s22 = sshll.u32 %s1914_s9, 4  ;;  %s1779_s22 = int_to_ptr.vmem [resolvable:$false] %s1778_s22 }
 0x2b2   : > { %s1780_s20 = scalar_lea.vmem %s1779_s22, 256  ;;  %p1781_p0 = scmp.lt.s32.totalorder %s1337_s24, %s1779_s22 }
 0x2b3   : > { %s1532_s5 = sshll.u32 %s2391_s7, 7  ;;  %p2394_p13 = scmp.ne.s32.totalorder %s2392_s4, 0 }
 0x2b4   : > { %s2276_s16 = scalar_lea.hbm %s2393_s14, %s1532_s5  ;;  %p1782_p5 = scmp.lt.s32.totalorder %s1780_s20, %s1774_s1 }
 0x2b5   : > { %p1776_p9 = pnand %p1775_p7, %p2394_p13 }
 0x2b6   : > { %p1783_p8 = por %p1782_p5, %p1781_p0 }
 0x2b7   : > { %p1777_p11 = pneg %p1776_p9 }
 0x2b9   : > { %p1784_p12 = pnand %p1783_p8, %p1777_p11 }
 0x2bb   : > { %1787 = shalt.err (!%p1784_p12)
}
 0x2bc   : > { %s1788_s3 = scalar_lea.hbm %s2276_s16, 128  ;;  %s1792_s21 = scalar_lea.hbm %s2393_s14, 256 }
 0x2bd   : > { %p1789_p2 = scmp.ne.s32.totalorder %s2276_s16, %s1788_s3  ;;  %p1793_p1 = scmp.lt.u32.totalorder %s2276_s16, %s2393_s14 }
 0x2be   : > { %p1794_p4 = scmp.lt.u32.totalorder %s1792_s21, %s1788_s3  ;;  %p1796_p7 = scmp.lt.u32.totalorder %s1788_s3, %s2276_s16 }
 0x2bf   : > { %p1790_p6 = pnand %p1789_p2, %p2394_p13 }
 0x2c0   : > { %p1795_p3 = por %p1794_p4, %p1793_p1 }
 0x2c1   : > { %p1791_p10 = pneg %p1790_p6 }
 0x2c2   : > { %p1797_p9 = por %p1796_p7, %p1795_p3 }
 0x2c4   : > { %p1798_p11 = pnand %p1797_p9, %p1791_p10 }
 0x2c6   : > { %1801 = shalt.err (!%p1798_p11)
}
 0x2c7   : > { %1561 = dma.vmem_to_hbm [thread:$0]  (%p2394_p13), %s1337_s24, 128, %s2276_s16, %s1322_s13  }
 0x2c8 PF: > { %s2395_s17 = sld [smem:[#allocation12_spill]]  ;;  %s2396_s7 = sld [smem:[#allocation17_spill]] }
 0x2c9   : > { %p1583_p0 = scmp.ge.s32.totalorder %s1900_s11, 2 }
 0x2ce   : > { %s1348_s5 = sand.u32 1, %s2395_s17   ;;  %p2397_p5 = scmp.ne.s32.totalorder %s2396_s7, 0 }
 0x2cf   : > { %s1349_s6 = scalar_lea.sflag [#allocation4], %s1348_s5 }
 0x2d0   : > { %p1575_p8 = pnand %p1583_p0, %p2397_p5 }
 0x2d2   : > { %1855 = dma.done.wait (!%p1575_p8), %s1349_s6, 128  }
 0x2d3   : > { %1857 = vsyncadd (!%p1575_p8), %s1349_s6, 4294967168  ;;  %s24_s11 = sadd.s32 1, %s1900_s11   ;;  %s2398_s30 = sld [smem:[#allocation15_spill]] }
 0x2d4   : > { %p21_p12 = scmp.ge.s32.totalorder %s24_s11, 8   ;;  %s2399_s9 = sld [smem:[#allocation18_spill]] }
 0x2d5   : > { %s2400_s24 = smov %s1864_s25  ;;  %s2401_s25 = smov %s1868_s26 }
 0x2d6   : > { %s2402_s26 = smov %s2126_s18  ;;  %s2403_s27 = smov %s1876_s28 }
 0x2d7   : > { %s2404_s28 = smov %s1880_s29  ;;  %s2405_s29 = smov %s2129_s12 }
 0x2d8   : > { %s2406_s8 = smov %s1896_s10  ;;  %s2407_s10 = smov %s2413_s15 }
 0x2d9   :  { %23 = sbr.rel (!%p21_p12) target bundleno = 17 (0x11), region = 109 }
 0x2e0   :  { %1354 = vsyncpa [#allocation3], 1 }
 0x2e1   :  { %1356 = vsyncpa [#allocation3 + $0x1], 1 }
 0x2e2   :  { %1357 = vsyncpa [#allocation6], 1 }
 0x2e3   :  { %1358 = vsyncpa [#allocation4], 1 }
 0x2e4   :  { %1360 = vsyncpa [#allocation4 + $0x1], 1 }

</bundles_post_ra>
